<compile_context>
chip_gen: v7x
topology: tpu7x:2x2x1
jax: 0.10.0
libtpu: 0.0.40
codegen_flags: <defaults>
</compile_context>

<pallas_src>
import jax
import jax.numpy as jnp
from jax.experimental import pallas as pl
from jax.experimental.pallas import tpu as pltpu

BLOCK_SIZE = 8
N_EMBED = 32
LANE = 128          # TPU lane width: pad vocab to a multiple of this
NEG_INF = -1e30     # finite "-inf" baked into the padded bias columns

# Deterministic "dataset" defining the vocabulary (mirrors `chars = sorted(set(text))`).
text = "the quick brown fox jumps over the lazy dog"
chars = sorted(list(set(text)))
vocab_size = len(chars)


def _emit_logits(idx_ref, table_ref, w_ref, b_ref, *, vocab, seq_len):
    """Lane-dense logits (BT, Vp) computed fully in-kernel.

    table_ref : (Vp, E)  rows 0..V-1 = token embeddings, rows V..V+T-1 = pos
                embeddings, remaining rows zero.
    w_ref     : (Vp, E)  lm_head weight, rows >= V zero.
    b_ref     : (1, Vp)  lm_head bias, columns >= V hold NEG_INF (CE mask baked in).
    """
    BT = idx_ref.shape[0]
    Vp = w_ref.shape[0]
    row = jax.lax.broadcasted_iota(jnp.int32, (BT, Vp), 0)
    col = jax.lax.broadcasted_iota(jnp.int32, (BT, Vp), 1)
    # Combined token + position one-hot: row r selects token idx[r] and
    # position column V + (r % T).  Token and pos columns never collide.
    sel = jnp.logical_or(col == idx_ref[...], col == vocab + jax.lax.rem(row, seq_len))
    onehot = jnp.where(sel, jnp.float32(1.0), jnp.float32(0.0))        # (BT, Vp)
    # Gather matmul: x = tok_emb[idx] + pos_emb[pos]  (single MXU pass, K=Vp).
    x = jnp.dot(onehot, table_ref[...], preferred_element_type=jnp.float32)  # (BT, E)
    # lm_head: logits = x @ W^T + b  (MXU, K=E=32; no wrapper-side transpose).
    logits = jax.lax.dot_general(
        x, w_ref[...],
        dimension_numbers=(((1,), (1,)), ((), ())),
        preferred_element_type=jnp.float32)                            # (BT, Vp)
    logits = logits + b_ref[...]                                       # padded cols -> NEG_INF
    return logits, col


def _emit_loss(logits, col, tgt_ref, loss_ref):
    """Mean cross-entropy; padded columns already at NEG_INF so no extra mask."""
    BT = logits.shape[0]
    m = jnp.max(logits, axis=-1, keepdims=True)                        # (BT, 1)
    lse = jnp.log(jnp.sum(jnp.exp(logits - m), axis=-1, keepdims=True))
    tgt_logit = jnp.sum(jnp.where(tgt_ref[...] == col, logits, 0.0),
                        axis=-1, keepdims=True)                        # targets < V, safe
    nll = (m + lse) - tgt_logit
    loss_ref[0] = jnp.sum(nll) * jnp.float32(1.0 / BT)                 # scalar -> SMEM


def make_logits_kernel(vocab, seq_len):
    def kernel(idx_ref, table_ref, w_ref, b_ref, logits_ref):
        logits, _ = _emit_logits(idx_ref, table_ref, w_ref, b_ref,
                                 vocab=vocab, seq_len=seq_len)
        logits_ref[...] = logits
    return kernel


def make_logits_loss_kernel(vocab, seq_len):
    def kernel(idx_ref, tgt_ref, table_ref, w_ref, b_ref, logits_ref, loss_ref):
        logits, col = _emit_logits(idx_ref, table_ref, w_ref, b_ref,
                                   vocab=vocab, seq_len=seq_len)
        logits_ref[...] = logits
        _emit_loss(logits, col, tgt_ref, loss_ref)
    return kernel


def make_loss_only_kernel(vocab, seq_len):
    def kernel(idx_ref, tgt_ref, table_ref, w_ref, b_ref, loss_ref):
        logits, col = _emit_logits(idx_ref, table_ref, w_ref, b_ref,
                                   vocab=vocab, seq_len=seq_len)
        _emit_loss(logits, col, tgt_ref, loss_ref)
    return kernel


def prepare_padded_params(tok_table, pos_table, lm_w, lm_b, T):
    """Parameter-side padding only (no matmuls). Hoist out of the training loop."""
    V, E = tok_table.shape
    Vp = ((V + LANE - 1) // LANE) * LANE
    assert V + T <= Vp, "combined token+position table must fit in one lane tile"
    table_pad = jnp.pad(
        jnp.concatenate([tok_table.astype(jnp.float32),
                         pos_table[:T].astype(jnp.float32)], axis=0),
        ((0, Vp - V - T), (0, 0)))                                      # (Vp, E)
    w_pad = jnp.pad(lm_w.astype(jnp.float32), ((0, Vp - V), (0, 0)))    # (Vp, E)
    b_pad = jnp.pad(lm_b.astype(jnp.float32).reshape(1, V),
                    ((0, 0), (0, Vp - V)), constant_values=NEG_INF)     # (1, Vp)
    return table_pad, w_pad, b_pad, Vp


_VMEM = pl.BlockSpec(memory_space=pltpu.MemorySpace.VMEM)
_SMEM = pl.BlockSpec(memory_space=pltpu.MemorySpace.SMEM)


def bigram_forward(idx, tok_table, pos_table, lm_w, lm_b, targets=None):
    """Returns (logits, loss); loss is None if targets is None (matching the module)."""
    B, T = idx.shape
    V, _ = tok_table.shape
    BT = B * T
    table_pad, w_pad, b_pad, Vp = prepare_padded_params(tok_table, pos_table, lm_w, lm_b, T)
    idx2 = idx.reshape(BT, 1).astype(jnp.int32)

    if targets is None:
        logits_pad = pl.pallas_call(
            make_logits_kernel(V, T),
            out_shape=jax.ShapeDtypeStruct((BT, Vp), jnp.float32),
            in_specs=[_VMEM, _VMEM, _VMEM, _VMEM],
            out_specs=_VMEM,
        )(idx2, table_pad, w_pad, b_pad)
        return logits_pad[:, :V].reshape(B, T, V), None

    tgt2 = targets.reshape(BT, 1).astype(jnp.int32)
    logits_pad, loss = pl.pallas_call(
        make_logits_loss_kernel(V, T),
        out_shape=(
            jax.ShapeDtypeStruct((BT, Vp), jnp.float32),
            jax.ShapeDtypeStruct((1,), jnp.float32),
        ),
        in_specs=[_VMEM, _VMEM, _VMEM, _VMEM, _VMEM],
        out_specs=(_VMEM, _SMEM),
    )(idx2, tgt2, table_pad, w_pad, b_pad)
    return logits_pad[:, :V].reshape(B, T, V), loss[0]


def bigram_loss(idx, tok_table, pos_table, lm_w, lm_b, targets):
    """Loss-only fast path (training step): no logits HBM writeback, no output slice."""
    B, T = idx.shape
    V, _ = tok_table.shape
    BT = B * T
    table_pad, w_pad, b_pad, _ = prepare_padded_params(tok_table, pos_table, lm_w, lm_b, T)
    idx2 = idx.reshape(BT, 1).astype(jnp.int32)
    tgt2 = targets.reshape(BT, 1).astype(jnp.int32)
    loss = pl.pallas_call(
        make_loss_only_kernel(V, T),
        out_shape=jax.ShapeDtypeStruct((1,), jnp.float32),
        in_specs=[_VMEM, _VMEM, _VMEM, _VMEM, _VMEM],
        out_specs=_SMEM,
    )(idx2, tgt2, table_pad, w_pad, b_pad)
    return loss[0]


def init_params(key):
    """Deterministic init matching PyTorch defaults: Embedding~N(0,1), Linear~U(-k,k)."""
    k_tok, k_pos, k_w, k_b = jax.random.split(key, 4)
    tok_table = jax.random.normal(k_tok, (vocab_size, N_EMBED), jnp.float32)
    pos_table = jax.random.normal(k_pos, (BLOCK_SIZE, N_EMBED), jnp.float32)
    k = 1.0 / jnp.sqrt(jnp.float32(N_EMBED))
    lm_w = jax.random.uniform(k_w, (vocab_size, N_EMBED), jnp.float32, -k, k)
    lm_b = jax.random.uniform(k_b, (vocab_size,), jnp.float32, -k, k)
    return tok_table, pos_table, lm_w, lm_b


if __name__ == "__main__":
    key = jax.random.PRNGKey(0)
    k_params, k_idx, k_tgt = jax.random.split(key, 3)

    tok_table, pos_table, lm_w, lm_b = init_params(k_params)

    B, T = 2, BLOCK_SIZE
    idx = jax.random.randint(k_idx, (B, T), 0, vocab_size, dtype=jnp.int32)
    targets = jax.random.randint(k_tgt, (B, T), 0, vocab_size, dtype=jnp.int32)

    logits, loss = bigram_forward(idx, tok_table, pos_table, lm_w, lm_b, targets)
    jax.block_until_ready((logits, loss))

    # Pure-JAX reference (mirrors the PyTorch forward).
    ref_logits = (tok_table[idx] + pos_table[:T][None, :, :]) @ lm_w.T + lm_b
    ref_ls = jax.nn.log_softmax(ref_logits.reshape(B * T, vocab_size), axis=-1)
    ref_loss = -jnp.mean(ref_ls[jnp.arange(B * T), targets.reshape(B * T)])

    assert logits.shape == (B, T, vocab_size)
    assert jnp.allclose(logits, ref_logits, atol=1e-4), "logits mismatch"
    assert jnp.allclose(loss, ref_loss, atol=1e-4), "loss mismatch"

    # targets=None path (logits-only kernel variant).
    logits_only, loss_none = bigram_forward(idx, tok_table, pos_table, lm_w, lm_b)
    jax.block_until_ready(logits_only)
    assert loss_none is None
    assert jnp.allclose(logits_only, ref_logits, atol=1e-4), "logits (no-loss path) mismatch"

    # Loss-only training fast path (no logits writeback).
    loss_fast = bigram_loss(idx, tok_table, pos_table, lm_w, lm_b, targets)
    jax.block_until_ready(loss_fast)
    assert jnp.allclose(loss_fast, ref_loss, atol=1e-4), "loss (loss-only path) mismatch"

    print("KERNEL_OK")
</pallas_src>

<mosaic_0001>
module attributes {stable_mosaic.version = 11 : i64} {
  func.func @kernel(%arg0: memref<16x1xi32, #tpu.memory_space<vmem>>, %arg1: memref<16x1xi32, #tpu.memory_space<vmem>>, %arg2: memref<128x32xf32, #tpu.memory_space<vmem>>, %arg3: memref<128x32xf32, #tpu.memory_space<vmem>>, %arg4: memref<1x128xf32, #tpu.memory_space<vmem>>, %arg5: memref<16x128xf32, #tpu.memory_space<vmem>>, %arg6: memref<1xf32, #tpu.memory_space<smem>>) attributes {dimension_semantics = [], scalar_prefetch = 0 : i64, scratch_operands = 0 : i64, tpu.core_type = #tpu.core_type<tc>} {
    %0 = tpu.iota {dimensions = array<i32: 0>} : vector<16x128xi32>
    %1 = tpu.iota {dimensions = array<i32: 1>} : vector<16x128xi32>
    %c0 = arith.constant 0 : index
    %c0_0 = arith.constant 0 : index
    %2 = vector.load %arg0[%c0, %c0_0] : memref<16x1xi32, #tpu.memory_space<vmem>>, vector<16x1xi32>
    %3 = vector.broadcast %2 : vector<16x1xi32> to vector<16x128xi32>
    %4 = arith.cmpi eq, %1, %3 : vector<16x128xi32>
    %c8_i32 = arith.constant 8 : i32
    %5 = vector.broadcast %c8_i32 : i32 to vector<16x128xi32>
    %6 = arith.remsi %0, %5 : vector<16x128xi32>
    %c27_i32 = arith.constant 27 : i32
    %7 = vector.broadcast %c27_i32 : i32 to vector<16x128xi32>
    %8 = arith.addi %7, %6 : vector<16x128xi32>
    %9 = arith.cmpi eq, %1, %8 : vector<16x128xi32>
    %10 = arith.ori %4, %9 : vector<16x128xi1>
    %cst = arith.constant 1.000000e+00 : f32
    %cst_1 = arith.constant 0.000000e+00 : f32
    %11 = vector.broadcast %cst : f32 to vector<16x128xf32>
    %12 = vector.broadcast %cst_1 : f32 to vector<16x128xf32>
    %13 = arith.select %10, %11, %12 : vector<16x128xi1>, vector<16x128xf32>
    %c0_2 = arith.constant 0 : index
    %c0_3 = arith.constant 0 : index
    %14 = vector.load %arg2[%c0_2, %c0_3] : memref<128x32xf32, #tpu.memory_space<vmem>>, vector<128x32xf32>
    %cst_4 = arith.constant dense<0.000000e+00> : vector<16x32xf32>
    %15 = tpu.matmul %13, %14, %cst_4 {dimension_numbers = #tpu.dot_dimension_numbers<[1], [0], [0], [1], [0, 0, 1, 1], [], []>} : vector<16x128xf32>, vector<128x32xf32>, vector<16x32xf32> -> vector<16x32xf32>
    %c0_5 = arith.constant 0 : index
    %c0_6 = arith.constant 0 : index
    %16 = vector.load %arg3[%c0_5, %c0_6] : memref<128x32xf32, #tpu.memory_space<vmem>>, vector<128x32xf32>
    %cst_7 = arith.constant dense<0.000000e+00> : vector<16x128xf32>
    %17 = tpu.matmul %15, %16, %cst_7 {dimension_numbers = #tpu.dot_dimension_numbers<[1], [1], [0], [0], [0, 0, 1, 0], [], []>} : vector<16x32xf32>, vector<128x32xf32>, vector<16x128xf32> -> vector<16x128xf32>
    %c0_8 = arith.constant 0 : index
    %c0_9 = arith.constant 0 : index
    %18 = vector.load %arg4[%c0_8, %c0_9] : memref<1x128xf32, #tpu.memory_space<vmem>>, vector<1x128xf32>
    %19 = vector.broadcast %18 : vector<1x128xf32> to vector<16x128xf32>
    %20 = arith.addf %17, %19 : vector<16x128xf32>
    %c0_10 = arith.constant 0 : index
    %c0_11 = arith.constant 0 : index
    %21 = vector.load %arg5[%c0_10, %c0_11] : memref<16x128xf32, #tpu.memory_space<vmem>>, vector<16x128xf32>
    tpu.vector_store %arg5[%c0_10, %c0_11], %20 {strides = array<i32>} : memref<16x128xf32, #tpu.memory_space<vmem>>, vector<16x128xf32>,
    %cst_12 = arith.constant dense<0xFF800000> : vector<16xf32>
    %22 = vector.multi_reduction <maximumf>, %20, %cst_12 [1] : vector<16x128xf32> to vector<16xf32>
    %23 = vector.shape_cast %22 : vector<16xf32> to vector<16x1xf32>
    %24 = vector.broadcast %23 : vector<16x1xf32> to vector<16x128xf32>
    %25 = arith.subf %20, %24 : vector<16x128xf32>
    %26 = math.exp %25 : vector<16x128xf32>
    %cst_13 = arith.constant dense<0.000000e+00> : vector<16xf32>
    %27 = vector.multi_reduction <add>, %26, %cst_13 [1] : vector<16x128xf32> to vector<16xf32>
    %28 = vector.shape_cast %27 : vector<16xf32> to vector<16x1xf32>
    %29 = math.log %28 : vector<16x1xf32>
    %c0_14 = arith.constant 0 : index
    %c0_15 = arith.constant 0 : index
    %30 = vector.load %arg1[%c0_14, %c0_15] : memref<16x1xi32, #tpu.memory_space<vmem>>, vector<16x1xi32>
    %31 = vector.broadcast %30 : vector<16x1xi32> to vector<16x128xi32>
    %32 = arith.cmpi eq, %31, %1 : vector<16x128xi32>
    %cst_16 = arith.constant 0.000000e+00 : f32
    %33 = vector.broadcast %cst_16 : f32 to vector<16x128xf32>
    %34 = arith.select %32, %20, %33 : vector<16x128xi1>, vector<16x128xf32>
    %cst_17 = arith.constant dense<0.000000e+00> : vector<16xf32>
    %35 = vector.multi_reduction <add>, %34, %cst_17 [1] : vector<16x128xf32> to vector<16xf32>
    %36 = vector.shape_cast %35 : vector<16xf32> to vector<16x1xf32>
    %37 = arith.addf %23, %29 : vector<16x1xf32>
    %38 = arith.subf %37, %36 : vector<16x1xf32>
    %39 = vector.shape_cast %38 : vector<16x1xf32> to vector<1x16x1xf32>
    %cst_18 = arith.constant dense<0.000000e+00> : vector<1xf32>
    %40 = vector.multi_reduction <add>, %39, %cst_18 [1, 2] : vector<1x16x1xf32> to vector<1xf32>
    %41 = vector.shape_cast %40 : vector<1xf32> to vector<1x1x1xf32>
    %42 = vector.extract %41[0, 0, 0] : f32 from vector<1x1x1xf32>
    %cst_19 = arith.constant 6.250000e-02 : f32
    %43 = arith.mulf %42, %cst_19 : f32
    %c0_20 = arith.constant 0 : index
    %44 = memref.load %arg6[%c0_20] : memref<1xf32, #tpu.memory_space<smem>>
    memref.store %43, %arg6[%c0_20] : memref<1xf32, #tpu.memory_space<smem>>
    return
  }
}

</mosaic_0001>

<bundles_post_ra>
// kernel: tpu_custom_call.1
= control target key start
LH: loop header
LB: loop body
LE: loop exit
PB: predicated region body
PF: predicated region fallthrough
CT: control target
= control target key end

     0   :  { %12 = vsyncpa [#allocation3], 0  ;;  %v651_v1 = vmov 0   ;;  %s867_s0 = inlined_call_operand.vmem [shape: s32[16,1], index: 0, kind: input, shape index: {}]   ;;  %s868_s1 = inlined_call_operand.vmem [shape: s32[16,1], index: 1, kind: input, shape index: {}]   ;;  %s869_s2 = inlined_call_operand.vmem [shape: f32[128,32], index: 2, kind: input, shape index: {}]   ;;  %s870_s3 = inlined_call_operand.vmem [shape: f32[128,32], index: 3, kind: input, shape index: {}]   ;;  %s871_s4 = inlined_call_operand.vmem [shape: f32[1,128], index: 4, kind: input, shape index: {}]   ;;  %s872_s5 = inlined_call_operand.hbm [shape: f32[16,128], index: 5, kind: output, shape index: {0}]   ;;  %s873_s6 = inlined_call_operand.hbm [shape: f32[1], index: 6, kind: output, shape index: {1}]  }
   0x1   :  { %v29_v0 = vld [vmem:[%s867_s0] sm:$0xff]  ;;  %605 = vset.pattern.permute.xlu0 %v651_v1  ;;  %v62_v3 = vld [vmem:[%s869_s2 + $0x8] sm:$0xff]  ;;  %v63_v4 = vld [vmem:[%s869_s2 + $0x10] sm:$0xff]  ;;  %606 = vset.pattern.permute.xlu1 %v651_v1 }
   0x2   :  { %v61_v2 = vld [vmem:[%s869_s2] sm:$0xff]  ;;  %32 = vperm.xlu0 %605, %v29_v0   ;;  %v64_v6 = vld [vmem:[%s869_s2 + $0x18] sm:$0xff]  ;;  %v30_v7 = vld [vmem:[%s867_s0 + $0x8] sm:$0xff] }
   0x3   :  { %v517_v5 = vpack.c.bf16 %v62_v3, %v61_v2  ;;  %v521_v8 = vpack.c.bf16 %v64_v6, %v63_v4  ;;  %v65_v9 = vld [vmem:[%s869_s2 + $0x20] sm:$0xff]  ;;  %v66_v10 = vld [vmem:[%s869_s2 + $0x28] sm:$0xff] }
   0x4   :  { %v525_v11 = vpack.c.bf16 %v66_v10, %v65_v9 }
   0x5   :  { %518 = vmatprep.subr.bf16.mxu0 %v517_v5 }
   0x6   :  { %520 = vmatpush3.bf16.msra.mxu0 %v517_v5  ;;  %35 = vperm.xlu0 %605, %v30_v7  }
   0x7   :  { %522 = vmatprep.subr.bf16.mxu0 %v521_v8 }
   0x8   :  { %13 = vsyncpa [#allocation4], 0  ;;  %v325_v12 = vld [vmem:[%s868_s1] sm:$0xff]  ;;  %v67_v13 = vld [vmem:[%s869_s2 + $0x30] sm:$0xff]  ;;  %vm175_vm0 = vcmask 261120   ;;  %v24_v53 = vlaneseq  ;;  %v652_v62 = vmov 1.0  }
   0x9   :  { %v68_v14 = vld [vmem:[%s869_s2 + $0x38] sm:$0xff]  ;;  %v69_v15 = vld [vmem:[%s869_s2 + $0x40] sm:$0xff]  ;;  %v153_v18 = vld [vmem:[%s870_s3 + $0x8] sm:$0xff]  ;;  %vm345_vm10 = vcmask 7168  }
   0xa   :  { %524 = vmatpush3.bf16.msra.mxu0 %v521_v8  ;;  %328 = vperm.xlu0 %605, %v325_v12   ;;  %v529_v16 = vpack.c.bf16 %v68_v14, %v67_v13  ;;  %v152_v17 = vld [vmem:[%s870_s3] sm:$0xff]  ;;  %v154_v19 = vld [vmem:[%s870_s3 + $0x10] sm:$0xff]  ;;  %v70_v20 = vld [vmem:[%s869_s2 + $0x48] sm:$0xff]  ;;  %v25_v54 = vshrl.u32 %v24_v53, 7  ;;  %v28_v57 = vand.u32 127, %v24_v53 }
   0xb   :  { %526 = vmatprep.subr.bf16.mxu0 %v525_v11  ;;  %v549_v21 = vpack.c.bf16 %v153_v18, %v152_v17  ;;  %vm742_vm1 = vmpackc.low %vm175_vm0, %vm175_vm0  ;;  %v155_v23 = vld [vmem:[%s870_s3 + $0x18] sm:$0xff]  ;;  %v533_v25 = vpack.c.bf16 %v70_v20, %v69_v15  ;;  %v71_v26 = vld [vmem:[%s869_s2 + $0x50] sm:$0xff] }
   0xc   :  { %v555_v24 = vpack.c.bf16 %v155_v23, %v154_v19  ;;  %v72_v27 = vld [vmem:[%s869_s2 + $0x58] sm:$0xff]  ;;  %v156_v28 = vld [vmem:[%s870_s3 + $0x20] sm:$0xff]  ;;  %v157_v29 = vld [vmem:[%s870_s3 + $0x28] sm:$0xff]  ;;  %v43_v55 = vand.u32 7, %v25_v54  ;;  %v26_v56 = vadd.s32 8, %v25_v54 }
   0xd   :  { %551 = vmatprep.subr.msk.bf16.mxu1 %vm742_vm1, %v549_v21  ;;  %v537_v30 = vpack.c.bf16 %v72_v27, %v71_v26  ;;  %v73_v31 = vld [vmem:[%s869_s2 + $0x60] sm:$0xff]  ;;  %v74_v32 = vld [vmem:[%s869_s2 + $0x68] sm:$0xff]  ;;  %v561_v33 = vpack.c.bf16 %v157_v29, %v156_v28  ;;  %v75_v35 = vld [vmem:[%s869_s2 + $0x70] sm:$0xff] }
   0xe   :  { %528 = vmatpush3.bf16.msra.mxu0 %v525_v11  ;;  %554 = vmatpush3.bf16.xpose.msk.msra.mxu1 %vm742_vm1, %v549_v21  ;;  %v541_v34 = vpack.c.bf16 %v74_v32, %v73_v31  ;;  %v76_v36 = vld [vmem:[%s869_s2 + $0x78] sm:$0xff]  ;;  %v158_v37 = vld [vmem:[%s870_s3 + $0x30] sm:$0xff]  ;;  %v160_v41 = vld [vmem:[%s870_s3 + $0x40] sm:$0xff]  ;;  %v53_v58 = vadd.s32 27, %v43_v55  ;;  %v50_v59 = vand.u32 7, %v26_v56 }
   0xf   :  { %530 = vmatprep.subr.bf16.mxu0 %v529_v16  ;;  %557 = vmatprep.subr.msk.bf16.mxu1 %vm742_vm1, %v555_v24  ;;  %v159_v38 = vld [vmem:[%s870_s3 + $0x38] sm:$0xff]  ;;  %v545_v39 = vpack.c.bf16 %v76_v36, %v75_v35  ;;  %v161_v42 = vld [vmem:[%s870_s3 + $0x48] sm:$0xff]  ;;  %v162_v44 = vld [vmem:[%s870_s3 + $0x50] sm:$0xff] }
  0x10   :  { %v567_v40 = vpack.c.bf16 %v159_v38, %v158_v37  ;;  %v573_v43 = vpack.c.bf16 %v161_v42, %v160_v41  ;;  %v163_v45 = vld [vmem:[%s870_s3 + $0x58] sm:$0xff]  ;;  %v164_v47 = vld [vmem:[%s870_s3 + $0x60] sm:$0xff]  ;;  %v165_v48 = vld [vmem:[%s870_s3 + $0x68] sm:$0xff]  ;;  %vm55_vm2 = vcmp.eq.s32.totalorder %v28_v57, %v53_v58  ;;  %v54_v60 = vadd.s32 27, %v50_v59 }
  0x11   :  { %v579_v46 = vpack.c.bf16 %v163_v45, %v162_v44  ;;  %v585_v49 = vpack.c.bf16 %v165_v48, %v164_v47  ;;  %v166_v50 = vld [vmem:[%s870_s3 + $0x70] sm:$0xff]  ;;  %v167_v51 = vld [vmem:[%s870_s3 + $0x78] sm:$0xff]  ;;  %v392_v2 = vld [vmem:[%s871_s4] ss:$0 sm:$0xff] }
  0x12   :  { %532 = vmatpush3.bf16.msra.mxu0 %v529_v16  ;;  %v591_v52 = vpack.c.bf16 %v167_v51, %v166_v50  ;;  %vm56_vm5 = vcmp.eq.s32.totalorder %v28_v57, %v54_v60  ;;  %v326_v7 = vld [vmem:[%s868_s1 + $0x8] sm:$0xff]  ;;  %s653_s1 = smov [#allocation2]  }
  0x13   :  { %534 = vmatprep.subr.bf16.mxu0 %v533_v25  ;;  %s366_s4 = sshll.u32 %s653_s1, 4  ;;  %s367_s4 = int_to_ptr.vmem [resolvable:$true] %s366_s4 }
  0x14   :  { %s615_s18 = scalar_lea.vmem %s367_s4, 256  ;;  %p620_p1 = scmp.lt.s32.totalorder %s367_s4, %s367_s4 }
  0x15   :  { %p616_p0 = scmp.ne.s32.totalorder %s367_s4, %s615_s18  ;;  %p621_p2 = scmp.lt.s32.totalorder %s615_s18, %s615_s18 }
  0x16   :  { %536 = vmatpush3.bf16.msra.mxu0 %v533_v25  ;;  %560 = vmatpush3.bf16.xpose.msk.msra.mxu1 %vm742_vm1, %v555_v24 }
  0x17   :  { %538 = vmatprep.subr.bf16.mxu0 %v537_v30  ;;  %563 = vmatprep.subr.msk.bf16.mxu1 %vm742_vm1, %v561_v33  ;;  %p622_p3 = por %p621_p2, %p620_p1 }
  0x19   :  { %p623_p4 = pnand %p622_p3, %p616_p0 }
  0x1a   :  { %540 = vmatpush3.bf16.msra.mxu0 %v537_v30 }
  0x1b   :  { %542 = vmatprep.subr.bf16.mxu0 %v541_v34 }
  0x1e   :  { %544 = vmatpush3.bf16.msra.mxu0 %v541_v34  ;;  %566 = vmatpush3.bf16.xpose.msk.msra.mxu1 %vm742_vm1, %v561_v33 }
  0x1f   :  { %546 = vmatprep.subr.bf16.mxu0 %v545_v39  ;;  %569 = vmatprep.subr.msk.bf16.mxu1 %vm742_vm1, %v567_v40 }
  0x22   :  { %548 = vmatpush3.bf16.msra.mxu0 %v545_v39 }
  0x26   :  { %572 = vmatpush3.bf16.xpose.msk.msra.mxu1 %vm742_vm1, %v567_v40 }
  0x27   :  { %575 = vmatprep.subr.msk.bf16.mxu1 %vm742_vm1, %v573_v43 }
  0x2e   :  { %578 = vmatpush3.bf16.xpose.msk.msra.mxu1 %vm742_vm1, %v573_v43 }
  0x2f   :  { %581 = vmatprep.subr.msk.bf16.mxu1 %vm742_vm1, %v579_v46 }
  0x36   :  { %584 = vmatpush3.bf16.xpose.msk.msra.mxu1 %vm742_vm1, %v579_v46 }
  0x37   :  { %587 = vmatprep.subr.msk.bf16.mxu1 %vm742_vm1, %v585_v49 }
  0x3e   :  { %590 = vmatpush3.bf16.xpose.msk.msra.mxu1 %vm742_vm1, %v585_v49 }
  0x3f   :  { %593 = vmatprep.subr.msk.bf16.mxu1 %vm742_vm1, %v591_v52 }
  0x46   :  { %596 = vmatpush3.bf16.xpose.msk.msra.mxu1 %vm742_vm1, %v591_v52 }
  0x81   :  { %v33_v61 = vpop.permute.xlu0 %32 }
  0x82   :  { %vm37_vm3 = vcmp.eq.s32.totalorder %v28_v57, %v33_v61 }
  0x83   :  { %vm57_vm4 = vmor %vm37_vm3, %vm55_vm2 }
  0x84   :  { %479 = vmatprep.mubr.msk.f32.mxu0 %vm57_vm4, %v652_v62 }
  0x85   :  { %v36_v63 = vpop.permute.xlu0 %35 }
  0x86   :  { %vm38_vm6 = vcmp.eq.s32.totalorder %v28_v57, %v36_v63 }
  0x87   :  { %vm58_vm7 = vmor %vm38_vm6, %vm56_vm5 }
  0x88   :  { %480 = vmatmul.mubr.msk.f32.vlgmr.msra.gmra.mrb[0].mxu0 %vm58_vm7, %v652_v62 }
  0x89   :  { %v329_v16 = vpop.permute.xlu0 %328 }
  0x8a   :  { %vm333_vm8 = vcmp.eq.s32.totalorder %v329_v16, %v28_v57 }
 0x15b   :  { %v481_v0 = vpop.f32.mrb[0].mxu0 }
 0x15c   :  { %v143_v1 = vpop.f32.mrb[1].mxu0 }
 0x15d   :  { %514 = vmatprep.mubr.msk.f32.mxu1 %vm175_vm0, %v143_v1 }
 0x15e   :  { %515 = vmatmul.mubr.msk.f32.vlgmr.msra.gmra.mrb[0].mxu1 %vm175_vm0, %v481_v0 }
 0x231   :  { %v516_v3 = vpop.f32.mrb[0].mxu1 }
 0x232   :  { %v302_v4 = vadd.f32 %v516_v3, %v392_v2  ;;  %v296_v5 = vpop.f32.mrb[1].mxu1 }
 0x233   :  { %v297_v6 = vadd.f32 %v392_v2, %v296_v5 }
 0x234   :  { %306 = vst [vmem:[#allocation2 + $0x8] sm:$0xff] %v302_v4  ;;  %309 = vmax.xlane.f32.xlu1 %v302_v4 }
 0x235   :  { %305 = vst [vmem:[#allocation2] sm:$0xff] %v297_v6  ;;  %v335_v18 = vsel %vm333_vm8, %v297_v6, 0.0 }
 0x238   :  { %307 = vmax.xlane.f32.xlu1 %v297_v6 }
 0x249   :  { %331 = vperm.xlu1 %606, %v326_v7  }
 0x2c1   :  { %v310_v8 = vpop.xlane.xlu1 %309 }
 0x2c2   :  { %v312_v9 = vsub.f32 %v302_v4, %v310_v8 }
 0x2c4   :  { %v315_v10 = vmul.f32 1.442695, %v312_v9 }
 0x2c5   :  { %v308_v11 = vpop.xlane.xlu1 %307 }
 0x2c6   :  { %607 = vpow2.f32 %v315_v10  ;;  %v311_v12 = vsub.f32 %v297_v6, %v308_v11 }
 0x2c8   :  { %v313_v13 = vmul.f32 1.442695, %v311_v12 }
 0x2c9   :  { %v332_v17 = vpop.permute.xlu1 %331 }
 0x2ca   :  { %609 = vpow2.f32 %v313_v13  ;;  %vm334_vm9 = vcmp.eq.s32.totalorder %v332_v17, %v28_v57 }
 0x2cb   :  { %v336_v19 = vsel %vm334_vm9, %v302_v4, 0.0 }
 0x2d0   :  { %v608_v14 = vpop.eup %607 }
 0x2d1   :  { %319 = vadd.xlane.f32.xlu1 %v608_v14 }
 0x2d4   :  { %v610_v15 = vpop.eup %609 }
 0x2d5   :  { %317 = vadd.xlane.f32.xlu0 %v610_v15 }
 0x2d9   :  { %337 = vadd.xlane.f32.xlu0 %v335_v18 }
 0x2dd   :  { %339 = vadd.xlane.f32.xlu0 %v336_v19 }
 0x35e   :  { %v320_v20 = vpop.xlane.xlu1 %319 }
 0x35f   :  { %611 = vlog2.f32 %v320_v20 }
 0x362   :  { %v318_v21 = vpop.xlane.xlu0 %317 }
 0x363   :  { %613 = vlog2.f32 %v318_v21 }
 0x366   :  { %v338_v23 = vpop.xlane.xlu0 %337 }
 0x369   :  { %v612_v22 = vpop.eup %611 }
 0x36a   :  { %v324_v24 = vmul.f32 0.6931472, %v612_v22  ;;  %v340_v28 = vpop.xlane.xlu0 %339 }
 0x36c   :  { %v342_v25 = vadd.f32 %v324_v24, %v310_v8 }
 0x36d   :  { %v614_v26 = vpop.eup %613 }
 0x36e   :  { %v322_v27 = vmul.f32 0.6931472, %v614_v26  ;;  %v344_v30 = vsub.f32 %v342_v25, %v340_v28 }
 0x370   :  { %v341_v29 = vadd.f32 %v322_v27, %v308_v11  ;;  %v347_v33 = vsel %vm345_vm10, %v344_v30, 0.0 }
 0x372   :  { %v343_v31 = vsub.f32 %v341_v29, %v338_v23 }
 0x374   :  { %v346_v32 = vsel %vm345_vm10, %v343_v31, 0.0 }
 0x375   :  { %v348_v34 = vadd.f32 %v347_v33, %v346_v32 }
 0x377   :  { %349 = vadd.xlane.f32.xlu0 %v348_v34 }
 0x378   :  { %626 = shalt.err (!%p623_p4)
}
 0x379   :  { %s627_s21 = scalar_lea.hbm %s872_s5, 256 }
 0x37a   :  { %p628_p5 = scmp.ne.s32.totalorder %s872_s5, %s627_s21  ;;  %p631_p6 = scmp.lt.u32.totalorder %s627_s21, %s872_s5 }
 0x37c   :  { %p633_p7 = pnand %p631_p6, %p628_p5 }
 0x37e   :  { %636 = shalt.err (!%p633_p7)
}
 0x37f   :  { %s654_s25 = smov 128   ;;  %s655_s26 = smov 8  }
 0x380   :  { %372 = dma.vmem_to_hbm [thread:$0]  %s367_s4, 256, %s872_s5, [#allocation3], %s654_s25, %s654_s25, %s655_s26  }
 0x381   :  { %s637_s9 = scalar_lea.hbm %s873_s6, 16 }
 0x382   :  { %p638_p8 = scmp.ne.s32.totalorder %s873_s6, %s637_s9  ;;  %p641_p9 = scmp.lt.u32.totalorder %s637_s9, %s873_s6 }
 0x384   :  { %p643_p10 = pnand %p641_p9, %p638_p8 }
 0x404   :  { %v350_v35 = vpop.xlane.xlu0 %349 }
 0x405   :  { %v351_v36 = vrot.slane %v350_v35, 4 }
 0x407   :  { %v352_v37 = vadd.f32 %v351_v36, %v350_v35 }
 0x409   :  { %v353_v38 = vrot.slane %v352_v37, 2 }
 0x40b   :  { %v354_v39 = vadd.f32 %v353_v38, %v352_v37 }
 0x40d   :  { %v355_v40 = vrot.slane %v354_v39, 1 }
 0x40f   :  { %v356_v41 = vadd.f32 %v355_v40, %v354_v39 }
 0x411   :  { %597 = vpush %v356_v41 }
 0x442   :  { %s598_s29 = spop %597 }
 0x443   :  { %s358_s30 = smul.f32 0.0625, %s598_s29 }
 0x445   :  { %360 = sst [smem:[#allocation5]] %s358_s30 }
 0x446   :  { %646 = shalt.err (!%p643_p10)
}
 0x447   :  { %s656_s13 = smov [#allocation5]  }
 0x448   :  { %380 = dma.smem_to_hbm %s656_s13, 16, %s873_s6, [#allocation4]  }
 0x449   :  { %647 = dma.done.wait [#allocation3], 256  }
 0x44a   :  { %648 = vsyncadd [#allocation3], 4294967040 }
 0x44b   :  { %649 = dma.done.wait [#allocation4], 16  }
 0x44c   :  { %650 = vsyncadd [#allocation4], 4294967280 }
 0x44d   :  { %387 = sfence }
 0x44e   :  { %388 = vsyncpa [#allocation3], 1 }
 0x44f   :  { %389 = vsyncpa [#allocation4], 1 }

</bundles_post_ra>
